<compile_context>
chip_gen: v7x
topology: tpu7x:2x2x1
jax: 0.10.0
libtpu: 0.0.40
codegen_flags: <defaults>
</compile_context>

<pallas_src>
import functools

import jax
import jax.numpy as jnp
from jax import lax
from jax.experimental import pallas as pl
from jax.experimental.pallas import tpu as pltpu


def _round_up(x, m):
    return ((x + m - 1) // m) * m


def _dense_leakyrelu_kernel(x_ref, w_ref, o_ref, acc_ref, *, negative_slope):
    # x_ref  : (tm, tk) activation tile
    # w_ref  : (tn, tk) weight tile in PyTorch (out, in) layout
    # o_ref  : (tm, tn) output tile
    # acc_ref: (tm, tn) f32 accumulator, resident across the K grid axis
    k = pl.program_id(2)

    @pl.when(k == 0)
    def _init():
        acc_ref[...] = jnp.zeros_like(acc_ref)

    # y += x @ w.T  -- the transpose is folded into the MXU contraction, so no
    # HBM transpose pass over the weight is needed.
    acc_ref[...] += lax.dot_general(
        x_ref[...],
        w_ref[...],
        dimension_numbers=(((1,), (1,)), ((), ())),
        preferred_element_type=jnp.float32,
    )

    @pl.when(k == pl.num_programs(2) - 1)
    def _finalize():
        y = acc_ref[...]
        # LeakyReLU (PyTorch default negative_slope=0.01).  For 0 < slope < 1,
        # leaky_relu(y) == max(y, slope*y): one mul + one max on the VPU.
        y = jnp.maximum(y, negative_slope * y)
        o_ref[...] = y.astype(o_ref.dtype)


def dense_forward(x, weight, *, negative_slope=0.01, tm=128, tn=256, tk=512):
    """Equivalent of Dense.forward: x.view(-1, in_size) -> Linear(no bias) -> LeakyReLU.

    x      : any shape whose trailing elements flatten to (-1, in_size)
    weight : (out_size, in_size)  -- PyTorch nn.Linear convention
    """
    out_size, in_size = weight.shape
    x2d = x.reshape(-1, in_size)  # the .view(-1, in_size) stays in plain JAX
    m, k = x2d.shape
    n = out_size

    # Clamp tile sizes to the (rounded-up) problem while keeping TPU tiling
    # rules: sublane-dim tiles multiples of 8, lane-dim tiles multiples of 128.
    tm = min(tm, _round_up(m, 8))     # sublane dim of x tile and output tile
    tn = min(tn, _round_up(n, 128))   # lane dim of output, sublane dim of w tile
    tk = min(tk, _round_up(k, 128))   # lane dim of x and w tiles

    mp = _round_up(m, tm)
    kp = _round_up(k, tk)
    np_ = _round_up(n, tn)

    # Zero-pad to tile multiples (zeros along K contribute nothing; padded M/N
    # rows/cols are sliced off at the end).  No-op pads are elided by XLA.
    if (mp, kp) != (m, k):
        x2d = jnp.pad(x2d, ((0, mp - m), (0, kp - k)))
    w = weight
    if (np_, kp) != (n, k):
        w = jnp.pad(weight, ((0, np_ - n), (0, kp - k)))

    grid = (mp // tm, np_ // tn, kp // tk)

    kernel = functools.partial(_dense_leakyrelu_kernel,
                               negative_slope=negative_slope)

    out = pl.pallas_call(
        kernel,
        out_shape=jax.ShapeDtypeStruct((mp, np_), x2d.dtype),
        grid_spec=pltpu.PrefetchScalarGridSpec(
            num_scalar_prefetch=0,
            grid=grid,
            in_specs=[
                pl.BlockSpec((tm, tk), lambda i, j, kk: (i, kk)),   # x tile
                pl.BlockSpec((tn, tk), lambda i, j, kk: (j, kk)),   # w tile
            ],
            out_specs=pl.BlockSpec((tm, tn), lambda i, j, kk: (i, j)),
            scratch_shapes=[pltpu.VMEM((tm, tn), jnp.float32)],
        ),
        compiler_params=pltpu.CompilerParams(
            dimension_semantics=("parallel", "parallel", "arbitrary"),
        ),
        cost_estimate=pl.CostEstimate(
            flops=2 * m * k * n,
            transcendentals=0,
            bytes_accessed=(x2d.size * x2d.dtype.itemsize
                            + w.size * w.dtype.itemsize
                            + mp * np_ * x2d.dtype.itemsize),
        ),
    )(x2d, w)

    return out[:m, :n]


def reference_forward(x, weight, negative_slope=0.01):
    out_size, in_size = weight.shape
    x2d = x.reshape(-1, in_size)
    y = x2d @ weight.T
    return jnp.where(y > 0, y, negative_slope * y)


if __name__ == "__main__":
    key = jax.random.PRNGKey(0)
    k_x, k_w, k_x2, k_w2 = jax.random.split(key, 4)

    # --- Small demo shapes matching the module's forward semantics ---
    in_size, out_size = 32, 64
    x = jax.random.normal(k_x, (2, 4, in_size), dtype=jnp.float32)

    # Deterministic init mimicking nn.Linear's uniform(-1/sqrt(in), 1/sqrt(in))
    bound = 1.0 / jnp.sqrt(jnp.float32(in_size))
    weight = jax.random.uniform(
        k_w, (out_size, in_size), minval=-bound, maxval=bound, dtype=jnp.float32
    )

    out = dense_forward(x, weight)
    out = jax.block_until_ready(out)
    ref = reference_forward(x, weight)
    assert out.shape == (8, out_size), out.shape
    assert jnp.allclose(out, ref, atol=1e-5, rtol=1e-5), "mismatch vs reference (small)"

    # --- Larger MXU-aligned shape: exercises real tiling + multi-step K accumulation ---
    m2, k2, n2 = 256, 1024, 384
    x2 = jax.random.normal(k_x2, (m2, k2), dtype=jnp.float32)
    w2 = jax.random.uniform(
        k_w2, (n2, k2), minval=-0.05, maxval=0.05, dtype=jnp.float32
    )
    out2 = jax.block_until_ready(dense_forward(x2, w2))
    ref2 = reference_forward(x2, w2)
    assert out2.shape == (m2, n2), out2.shape
    assert jnp.allclose(out2, ref2, atol=1e-4, rtol=1e-4), "mismatch vs reference (tiled)"

    print("KERNEL_OK")
</pallas_src>

<mosaic_0001>
module attributes {stable_mosaic.version = 11 : i64} {
  func.func @_dense_leakyrelu_kernel(%arg0: i32, %arg1: i32, %arg2: i32, %arg3: memref<8x128xf32, #tpu.memory_space<vmem>>, %arg4: memref<128x128xf32, #tpu.memory_space<vmem>>, %arg5: memref<8x128xf32, #tpu.memory_space<vmem>>, %arg6: memref<8x128xf32, #tpu.memory_space<vmem>>) attributes {dimension_semantics = [#tpu.dimension_semantics<parallel>, #tpu.dimension_semantics<parallel>, #tpu.dimension_semantics<arbitrary>], iteration_bounds = array<i64: 1, 1, 1>, scalar_prefetch = 0 : i64, scratch_operands = 1 : i64, tpu.core_type = #tpu.core_type<tc>, window_params = [{transform_indices = @transform_0, window_bounds = array<i64: 8, 128>}, {transform_indices = @transform_1, window_bounds = array<i64: 128, 128>}, {transform_indices = @transform_2, window_bounds = array<i64: 8, 128>}]} {
    %c0_i32 = arith.constant 0 : i32
    %0 = arith.cmpi eq, %arg2, %c0_i32 : i32
    %1 = arith.extui %0 : i1 to i32
    %c0_i32_0 = arith.constant 0 : i32
    %2 = arith.cmpi ne, %1, %c0_i32_0 : i32
    scf.if %2 {
      %cst_10 = arith.constant 0.000000e+00 : f32
      %12 = vector.broadcast %cst_10 : f32 to vector<8x128xf32>
      %c0_11 = arith.constant 0 : index
      %c0_12 = arith.constant 0 : index
      %13 = vector.load %arg6[%c0_11, %c0_12] : memref<8x128xf32, #tpu.memory_space<vmem>>, vector<8x128xf32>
      tpu.vector_store %arg6[%c0_11, %c0_12], %12 {strides = array<i32>} : memref<8x128xf32, #tpu.memory_space<vmem>>, vector<8x128xf32>,
    } else {
    }
    %c0 = arith.constant 0 : index
    %c0_1 = arith.constant 0 : index
    %3 = vector.load %arg6[%c0, %c0_1] : memref<8x128xf32, #tpu.memory_space<vmem>>, vector<8x128xf32>
    %c0_2 = arith.constant 0 : index
    %c0_3 = arith.constant 0 : index
    %4 = vector.load %arg3[%c0_2, %c0_3] : memref<8x128xf32, #tpu.memory_space<vmem>>, vector<8x128xf32>
    %c0_4 = arith.constant 0 : index
    %c0_5 = arith.constant 0 : index
    %5 = vector.load %arg4[%c0_4, %c0_5] : memref<128x128xf32, #tpu.memory_space<vmem>>, vector<128x128xf32>
    %cst = arith.constant dense<0.000000e+00> : vector<8x128xf32>
    %6 = tpu.matmul %4, %5, %cst {dimension_numbers = #tpu.dot_dimension_numbers<[1], [1], [0], [0], [0, 0, 1, 0], [], []>} : vector<8x128xf32>, vector<128x128xf32>, vector<8x128xf32> -> vector<8x128xf32>
    %7 = arith.addf %3, %6 : vector<8x128xf32>
    %c0_6 = arith.constant 0 : index
    %c0_7 = arith.constant 0 : index
    %8 = vector.load %arg6[%c0_6, %c0_7] : memref<8x128xf32, #tpu.memory_space<vmem>>, vector<8x128xf32>
    tpu.vector_store %arg6[%c0_6, %c0_7], %7 {strides = array<i32>} : memref<8x128xf32, #tpu.memory_space<vmem>>, vector<8x128xf32>,
    %c0_i32_8 = arith.constant 0 : i32
    %9 = arith.cmpi eq, %arg2, %c0_i32_8 : i32
    %10 = arith.extui %9 : i1 to i32
    %c0_i32_9 = arith.constant 0 : i32
    %11 = arith.cmpi ne, %10, %c0_i32_9 : i32
    scf.if %11 {
      %c0_10 = arith.constant 0 : index
      %c0_11 = arith.constant 0 : index
      %12 = vector.load %arg6[%c0_10, %c0_11] : memref<8x128xf32, #tpu.memory_space<vmem>>, vector<8x128xf32>
      %cst_12 = arith.constant 0.00999999977 : f32
      %13 = vector.broadcast %cst_12 : f32 to vector<8x128xf32>
      %14 = arith.mulf %13, %12 : vector<8x128xf32>
      %15 = arith.maximumf %12, %14 : vector<8x128xf32>
      %c0_13 = arith.constant 0 : index
      %c0_14 = arith.constant 0 : index
      %16 = vector.load %arg5[%c0_13, %c0_14] : memref<8x128xf32, #tpu.memory_space<vmem>>, vector<8x128xf32>
      tpu.vector_store %arg5[%c0_13, %c0_14], %15 {strides = array<i32>} : memref<8x128xf32, #tpu.memory_space<vmem>>, vector<8x128xf32>,
    } else {
    }
    return
  }
  func.func @transform_0(%arg0: i32, %arg1: i32, %arg2: i32) -> (i32, i32) {
    %c0_i32 = arith.constant 0 : i32
    return %arg0, %arg2 : i32, i32
  }
  func.func @transform_1(%arg0: i32, %arg1: i32, %arg2: i32) -> (i32, i32) {
    %c0_i32 = arith.constant 0 : i32
    return %arg1, %arg2 : i32, i32
  }
  func.func @transform_2(%arg0: i32, %arg1: i32, %arg2: i32) -> (i32, i32) {
    %c0_i32 = arith.constant 0 : i32
    return %arg0, %arg1 : i32, i32
  }
}

</mosaic_0001>

<bundles_post_ra>
// kernel: tpu_custom_call.1
= control target key start
LH: loop header
LB: loop body
LE: loop exit
PB: predicated region body
PF: predicated region fallthrough
CT: control target
= control target key end

     0   :  { %7 = vsyncpa [#allocation4], 0  ;;  %s378_s0 = inlined_call_operand.hbm [shape: f32[8,128], index: 0, kind: input, shape index: {}]   ;;  %s379_s1 = inlined_call_operand.hbm [shape: f32[128,128], index: 1, kind: input, shape index: {}]   ;;  %s380_s2 = inlined_call_operand.hbm [shape: f32[8,128], index: 2, kind: output, shape index: {}]  }
   0x1   :  { %8 = vsyncpa [#allocation7], 0 }
   0x2   :  { %9 = vsyncpa [#allocation5], 0  ;;  %s312_s9 = smov [#allocation3]   ;;  %s313_s11 = smov [#allocation6]  }
   0x3   :  { %s16_s10 = sshll.u32 %s312_s9, 4  ;;  %s25_s12 = sshll.u32 %s313_s11, 4  ;;  %s17_s10 = int_to_ptr.vmem [resolvable:$true] %s16_s10  ;;  %s335_s12 = int_to_ptr.vmem [resolvable:$true] %s25_s12 }
   0x4   :  { %s240_s15 = scalar_lea.hbm %s378_s0, 128 }
   0x5   :  { %p241_p0 = scmp.ne.s32.totalorder %s378_s0, %s240_s15  ;;  %p244_p1 = scmp.lt.u32.totalorder %s240_s15, %s378_s0 }
   0x7   :  { %p246_p2 = pnand %p244_p1, %p241_p0 }
   0x9   :  { %249 = shalt.err (!%p246_p2)
}
   0xa   :  { %s250_s20 = scalar_lea.vmem %s17_s10, 128  ;;  %p255_p4 = scmp.lt.s32.totalorder %s17_s10, %s17_s10 }
   0xb   :  { %p251_p3 = scmp.ne.s32.totalorder %s17_s10, %s250_s20  ;;  %p256_p5 = scmp.lt.s32.totalorder %s250_s20, %s250_s20 }
   0xd   :  { %p257_p6 = por %p256_p5, %p255_p4 }
   0xf   :  { %p258_p7 = pnand %p257_p6, %p251_p3 }
  0x11   :  { %261 = shalt.err (!%p258_p7)
}
  0x12   :  { %19 = dma.hbm_to_vmem [thread:$0]  %s378_s0, 128, %s17_s10, [#allocation4]  }
  0x13   :  { %s262_s25 = scalar_lea.hbm %s379_s1, 2048 }
  0x14   :  { %p263_p8 = scmp.ne.s32.totalorder %s379_s1, %s262_s25  ;;  %p266_p9 = scmp.lt.u32.totalorder %s262_s25, %s379_s1 }
  0x16   :  { %p268_p10 = pnand %p266_p9, %p263_p8 }
  0x18   :  { %271 = shalt.err (!%p268_p10)
}
  0x19   :  { %s272_s30 = scalar_lea.vmem %s335_s12, 2048  ;;  %p277_p12 = scmp.lt.s32.totalorder %s335_s12, %s335_s12 }
  0x1a   :  { %p273_p11 = scmp.ne.s32.totalorder %s335_s12, %s272_s30  ;;  %p278_p13 = scmp.lt.s32.totalorder %s272_s30, %s272_s30 }
  0x1c   :  { %p279_p0 = por %p278_p13, %p277_p12 }
  0x1e   :  { %p280_p1 = pnand %p279_p0, %p273_p11 }
  0x20   :  { %283 = shalt.err (!%p280_p1)
}
  0x21   :  { %s314_s0 = smov 128   ;;  %s315_s3 = smov 8  }
  0x22   :  { %31 = dma.hbm_to_vmem [thread:$0]  %s379_s1, 2048, %s335_s12, [#allocation7], %s314_s0, %s314_s0, %s315_s3  }
  0x23   :  { %306 = dma.done.wait [#allocation4], 128  }
  0x24   :  { %307 = vsyncadd [#allocation4], 4294967168 }
  0x25   :  { %308 = dma.done.wait [#allocation7], 2048  }
  0x26   :  { %309 = vsyncadd [#allocation7], 4294965248  ;;  %v316_v0 = vmov 0.0|0.0   ;;  %vm317_vm0 = vmmov 0   ;;  %v318_v1 = vmov 0.0   ;;  %v45_v2 = vld [vmem:[#allocation6] sm:$0xff] }
  0x27   :  { %208 = vmatprep.subr.bf16.mxu0 %v316_v0  ;;  %205 = vmatprep.mubr.msk.f32.mxu0 %vm317_vm0, %v318_v1  ;;  %v46_v3 = vld [vmem:[#allocation6 + $0x8] sm:$0xff]  ;;  %v47_v5 = vld [vmem:[#allocation6 + $0x10] sm:$0xff]  ;;  %v48_v6 = vld [vmem:[#allocation6 + $0x18] sm:$0xff]  ;;  %s319_s1 = smov [#allocation8]  }
  0x28   :  { %v209_v4 = vpack.c.bf16 %v46_v3, %v45_v2  ;;  %v212_v7 = vpack.c.bf16 %v48_v6, %v47_v5  ;;  %v49_v8 = vld [vmem:[#allocation6 + $0x20] sm:$0xff]  ;;  %v50_v9 = vld [vmem:[#allocation6 + $0x28] sm:$0xff]  ;;  %v51_v11 = vld [vmem:[#allocation6 + $0x30] sm:$0xff]  ;;  %s146_s6 = sshll.u32 %s319_s1, 4  ;;  %s147_s6 = int_to_ptr.vmem [resolvable:$true] %s146_s6 }
  0x29   :  { %v215_v10 = vpack.c.bf16 %v50_v9, %v49_v8  ;;  %v52_v12 = vld [vmem:[#allocation6 + $0x38] sm:$0xff]  ;;  %v53_v14 = vld [vmem:[#allocation6 + $0x40] sm:$0xff]  ;;  %v54_v15 = vld [vmem:[#allocation6 + $0x48] sm:$0xff]  ;;  %s284_s7 = scalar_lea.vmem %s147_s6, 128  ;;  %p289_p3 = scmp.lt.s32.totalorder %s147_s6, %s147_s6 }
  0x2a   :  { %210 = vmatpush3.bf16.xpose.msra.mxu0 %v209_v4  ;;  %v218_v13 = vpack.c.bf16 %v52_v12, %v51_v11  ;;  %v221_v16 = vpack.c.bf16 %v54_v15, %v53_v14  ;;  %v55_v17 = vld [vmem:[#allocation6 + $0x50] sm:$0xff]  ;;  %v56_v18 = vld [vmem:[#allocation6 + $0x58] sm:$0xff]  ;;  %v57_v20 = vld [vmem:[#allocation6 + $0x60] sm:$0xff]  ;;  %p285_p2 = scmp.ne.s32.totalorder %s147_s6, %s284_s7  ;;  %p290_p4 = scmp.lt.s32.totalorder %s284_s7, %s284_s7 }
  0x2b   :  { %211 = vmatprep.subr.bf16.mxu0 %v316_v0  ;;  %v224_v19 = vpack.c.bf16 %v56_v18, %v55_v17  ;;  %v58_v21 = vld [vmem:[#allocation6 + $0x68] sm:$0xff]  ;;  %v59_v23 = vld [vmem:[#allocation6 + $0x70] sm:$0xff]  ;;  %v60_v24 = vld [vmem:[#allocation6 + $0x78] sm:$0xff] }
  0x2c   :  { %v227_v22 = vpack.c.bf16 %v58_v21, %v57_v20  ;;  %v230_v25 = vpack.c.bf16 %v60_v24, %v59_v23  ;;  %v44_v26 = vld [vmem:[#allocation3] sm:$0xff]  ;;  %p291_p5 = por %p290_p4, %p289_p3 }
  0x2e   :  { %p292_p6 = pnand %p291_p5, %p285_p2 }
  0x32   :  { %213 = vmatpush3.bf16.xpose.msra.mxu0 %v212_v7 }
  0x33   :  { %214 = vmatprep.subr.bf16.mxu0 %v316_v0 }
  0x3a   :  { %216 = vmatpush3.bf16.xpose.msra.mxu0 %v215_v10 }
  0x3b   :  { %217 = vmatprep.subr.bf16.mxu0 %v316_v0 }
  0x42   :  { %219 = vmatpush3.bf16.xpose.msra.mxu0 %v218_v13 }
  0x43   :  { %220 = vmatprep.subr.bf16.mxu0 %v316_v0 }
  0x4a   :  { %222 = vmatpush3.bf16.xpose.msra.mxu0 %v221_v16 }
  0x4b   :  { %223 = vmatprep.subr.bf16.mxu0 %v316_v0 }
  0x52   :  { %225 = vmatpush3.bf16.xpose.msra.mxu0 %v224_v19 }
  0x53   :  { %226 = vmatprep.subr.bf16.mxu0 %v316_v0 }
  0x5a   :  { %228 = vmatpush3.bf16.xpose.msra.mxu0 %v227_v22 }
  0x5b   :  { %229 = vmatprep.subr.bf16.mxu0 %v316_v0 }
  0x62   :  { %231 = vmatpush3.bf16.xpose.msra.mxu0 %v230_v25 }
  0x69   :  { %206 = vmatmul.mubr.f32.vlgmr.msra.gmra.mrb[0].mxu0 %v44_v26 }
 0x13c   :  { %v127_v27 = vpop.f32.mrb[0].mxu0 }
 0x13d   :  { %v137_v28 = vmul.f32 0.01, %v127_v27  ;;  %v207_v29 = vpop.f32.mrb[1].mxu0 }
 0x13f   :  { %v138_v30 = vmax.f32 %v127_v27, %v137_v28 }
 0x141   :  { %139 = vst [vmem:[#allocation8] sm:$0xff] %v138_v30 }
 0x142   :  { %295 = shalt.err (!%p292_p6)
}
 0x143   :  { %s296_s10 = scalar_lea.hbm %s380_s2, 128 }
 0x144   :  { %p297_p7 = scmp.ne.s32.totalorder %s380_s2, %s296_s10  ;;  %p300_p8 = scmp.lt.u32.totalorder %s296_s10, %s380_s2 }
 0x146   :  { %p302_p9 = pnand %p300_p8, %p297_p7 }
 0x148   :  { %305 = shalt.err (!%p302_p9)
}
 0x149   :  { %149 = dma.vmem_to_hbm [thread:$0]  %s147_s6, 128, %s380_s2, [#allocation5]  }
 0x14a   :  { %310 = dma.done.wait [#allocation5], 128  }
 0x14b   :  { %311 = vsyncadd [#allocation5], 4294967168 }
 0x14c   :  { %153 = vsyncpa [#allocation4], 1 }
 0x14d   :  { %154 = vsyncpa [#allocation7], 1 }
 0x14e   :  { %155 = vsyncpa [#allocation5], 1 }

</bundles_post_ra>
